<compile_context>
chip_gen: v5e
topology: v5e:2x2
jax: 0.10.0
libtpu: 0.0.40
codegen_flags: <defaults>
</compile_context>

<pallas_src>
import functools

import numpy as np
import jax
import jax.numpy as jnp
from jax import lax
from jax.experimental import pallas as pl
from jax.experimental.pallas import tpu as pltpu

BN_EPS = 1e-5  # nn.BatchNorm2d default


# --------------------------------- Pallas kernel ---------------------------------

def _sequpsample_kernel(x_ref, ryp_ref, cxbd_ref, n_ref, b1_ref, m_ref, b2_ref,
                        o_ref, *, ho):
    """Fused bilinear-upsample + DoubleConv (BN folded) for one batch element.

    x_ref    : (1, hi, c_in*wi)          channel-lane-packed input
    ryp_ref  : (ho+2, hi)                row-interp matrix, zero first/last row
    cxbd_ref : (c_in*wi, c_in*(wo+2))    block-diag col-interp, zero border cols
    n_ref    : (3, c_in*(wo+2), mid*(wo+2))   conv1 per-row-tap matrices (BN1 folded)
    b1_ref   : (1, mid*(wo+2))           conv1 bias row (zeros at border cols)
    m_ref    : (3, mid*(wo+2), c_out*wo) conv2 per-row-tap matrices (BN2 folded)
    b2_ref   : (1, c_out*wo)             conv2 bias row
    o_ref    : (1, ho, c_out*wo)         lane-dense output
    """
    # --- bilinear upsample (align_corners=True): two MXU matmuls.  Result is
    #     channel-packed along lanes and already zero-padded for conv1. ---
    t = jnp.dot(x_ref[0], cxbd_ref[...], preferred_element_type=jnp.float32)   # (hi, c_in*(wo+2))
    xp = jnp.dot(ryp_ref[...], t, preferred_element_type=jnp.float32)          # (ho+2, c_in*(wo+2))

    # --- conv1 (3x3, pad 1) + folded BN1 + ReLU: one MXU matmul per row tap ---
    h1 = b1_ref[...]                                                            # broadcasts over rows
    for dy in range(3):
        h1 = h1 + jnp.dot(xp[dy:dy + ho, :], n_ref[dy],
                          preferred_element_type=jnp.float32)
    h1 = jnp.maximum(h1, 0.0)                       # (ho, mid*(wo+2)), border cols stay 0

    # zero border rows for conv2 (no scratch, no pad op on a ref)
    zrow = jnp.zeros((1, h1.shape[1]), jnp.float32)
    h1p = jnp.concatenate([zrow, h1, zrow], axis=0)  # (ho+2, mid*(wo+2))

    # --- conv2 (3x3, pad 1) + folded BN2 + ReLU: one MXU matmul per row tap ---
    acc = b2_ref[...]
    for dy in range(3):
        acc = acc + jnp.dot(h1p[dy:dy + ho, :], m_ref[dy],
                            preferred_element_type=jnp.float32)
    o_ref[0] = jnp.maximum(acc, 0.0).astype(o_ref.dtype)    # lane-dense (ho, c_out*wo)


# --------------------------------- host helpers ---------------------------------

def _bilinear_matrix(n_in, n_out):
    """(n_out, n_in) matrix M so that M @ v is 1-D linear interp, align_corners=True."""
    m = np.zeros((n_out, n_in), np.float32)
    if n_in == 1 or n_out == 1:
        m[:, 0] = 1.0
        return m
    src = np.arange(n_out, dtype=np.float64) * (n_in - 1) / (n_out - 1)
    lo = np.clip(np.floor(src).astype(np.int64), 0, n_in - 1)
    hi = np.minimum(lo + 1, n_in - 1)
    frac = (src - lo).astype(np.float32)
    idx = np.arange(n_out)
    m[idx, lo] += 1.0 - frac
    m[idx, hi] += frac
    return m


def _fold_bn(w, b, gamma, beta, mean, var, eps=BN_EPS):
    """Fold eval-mode BatchNorm2d into the preceding conv's weight and bias (numpy)."""
    w = np.asarray(w, np.float32)
    b = np.asarray(b, np.float32)
    scale = np.asarray(gamma, np.float32) / np.sqrt(np.asarray(var, np.float32) + eps)
    return w * scale[:, None, None, None], (b - np.asarray(mean, np.float32)) * scale \
        + np.asarray(beta, np.float32)


def _pack_operands(params, hi, wi, ho, wo, c_in, mid, c_out):
    """Host-side packing of interp matrices, conv-tap matrices and bias rows."""
    wp = wo + 2

    w1f, b1f = _fold_bn(params["w1"], params["b1"], params["bn1_gamma"],
                        params["bn1_beta"], params["bn1_mean"], params["bn1_var"])
    w2f, b2f = _fold_bn(params["w2"], params["b2"], params["bn2_gamma"],
                        params["bn2_beta"], params["bn2_mean"], params["bn2_var"])

    # row-interp, zero-padded rows (top/bottom) -> upsample output comes out row-padded
    ryp = np.zeros((ho + 2, hi), np.float32)
    ryp[1:ho + 1] = _bilinear_matrix(hi, ho)

    # col-interp, zero-padded cols, block-diagonal over channels (channel-lane-packed out)
    cxp = np.zeros((wi, wp), np.float32)
    cxp[:, 1:wo + 1] = _bilinear_matrix(wi, wo).T
    cxbd = np.zeros((c_in * wi, c_in * wp), np.float32)
    for c in range(c_in):
        cxbd[c * wi:(c + 1) * wi, c * wp:(c + 1) * wp] = cxp

    xs = np.arange(wo)

    # conv1 per-row-tap matrices: (3, c_in*wp, mid*wp); output keeps zero border cols
    n_all = np.zeros((3, c_in * wp, mid * wp), np.float32)
    for dy in range(3):
        for dx in range(3):
            for c in range(c_in):
                for m in range(mid):
                    n_all[dy, c * wp + dx + xs, m * wp + 1 + xs] += w1f[m, c, dy, dx]

    # conv2 per-row-tap matrices: (3, mid*wp, c_out*wo); output is lane-dense
    m_all = np.zeros((3, mid * wp, c_out * wo), np.float32)
    for dy in range(3):
        for dx in range(3):
            for m in range(mid):
                for o in range(c_out):
                    m_all[dy, m * wp + dx + xs, o * wo + xs] += w2f[o, m, dy, dx]

    b1row = np.zeros((1, mid * wp), np.float32)
    for m in range(mid):
        b1row[0, m * wp + 1:m * wp + 1 + wo] = b1f[m]
    b2row = np.zeros((1, c_out * wo), np.float32)
    for o in range(c_out):
        b2row[0, o * wo:(o + 1) * wo] = b2f[o]

    return (jnp.asarray(ryp), jnp.asarray(cxbd), jnp.asarray(n_all),
            jnp.asarray(b1row), jnp.asarray(m_all), jnp.asarray(b2row))


def sequpsample_forward(x, params, *, scale_factor):
    B, c_in, hi, wi = x.shape
    ho, wo = hi * scale_factor, wi * scale_factor
    mid = params["w1"].shape[0]
    c_out = params["w2"].shape[0]
    wp = wo + 2

    ryp, cxbd, n_all, b1row, m_all, b2row = _pack_operands(
        params, hi, wi, ho, wo, c_in, mid, c_out)

    # channel-lane-packed input layout: x_hwc[b, i, c*wi + j] = x[b, c, i, j]
    x_hwc = jnp.transpose(x, (0, 2, 1, 3)).reshape(B, hi, c_in * wi)

    kernel = functools.partial(_sequpsample_kernel, ho=ho)

    flops = 2 * B * (hi * (c_in * wi) * (c_in * wp)          # W-interp matmul
                     + (ho + 2) * hi * (c_in * wp)           # H-interp matmul
                     + 3 * ho * (c_in * wp) * (mid * wp)     # conv1 (3 row taps)
                     + 3 * ho * (mid * wp) * (c_out * wo))   # conv2 (3 row taps)
    bytes_accessed = 4 * (x.size + B * ho * c_out * wo + ryp.size + cxbd.size
                          + n_all.size + m_all.size + b1row.size + b2row.size)

    out = pl.pallas_call(
        kernel,
        out_shape=jax.ShapeDtypeStruct((B, ho, c_out * wo), x.dtype),
        grid=(B,),
        in_specs=[
            pl.BlockSpec((1, hi, c_in * wi), lambda b: (b, 0, 0)),       # x (per batch)
            pl.BlockSpec((ho + 2, hi), lambda b: (0, 0)),                # ryp
            pl.BlockSpec((c_in * wi, c_in * wp), lambda b: (0, 0)),      # cxbd
            pl.BlockSpec((3, c_in * wp, mid * wp), lambda b: (0, 0, 0)),  # conv1 taps
            pl.BlockSpec((1, mid * wp), lambda b: (0, 0)),               # bias1 row
            pl.BlockSpec((3, mid * wp, c_out * wo), lambda b: (0, 0, 0)),  # conv2 taps
            pl.BlockSpec((1, c_out * wo), lambda b: (0, 0)),             # bias2 row
        ],
        out_specs=pl.BlockSpec((1, ho, c_out * wo), lambda b: (b, 0, 0)),
        compiler_params=pltpu.CompilerParams(dimension_semantics=("parallel",)),
        cost_estimate=pl.CostEstimate(flops=flops, transcendentals=0,
                                      bytes_accessed=bytes_accessed),
    )(x_hwc, ryp, cxbd, n_all, b1row, m_all, b2row)

    # lane-dense (B, ho, c_out*wo) -> NCHW (free layout plumbing in the wrapper)
    return out.reshape(B, ho, c_out, wo).transpose(0, 2, 1, 3)


# ------------------------------ pure-JAX reference ------------------------------

def _ref_upsample_bilinear(x, ho, wo):
    B, C, hi, wi = x.shape
    sy = jnp.arange(ho, dtype=jnp.float32) * (hi - 1) / (ho - 1)
    sx = jnp.arange(wo, dtype=jnp.float32) * (wi - 1) / (wo - 1)
    y0 = jnp.clip(jnp.floor(sy).astype(jnp.int32), 0, hi - 1)
    x0 = jnp.clip(jnp.floor(sx).astype(jnp.int32), 0, wi - 1)
    y1 = jnp.minimum(y0 + 1, hi - 1)
    x1 = jnp.minimum(x0 + 1, wi - 1)
    wy = (sy - y0.astype(jnp.float32))[None, None, :, None]
    wx = (sx - x0.astype(jnp.float32))[None, None, None, :]
    g = lambda yi, xi: x[:, :, yi[:, None], xi[None, :]]
    return (g(y0, x0) * (1 - wy) * (1 - wx) + g(y0, x1) * (1 - wy) * wx
            + g(y1, x0) * wy * (1 - wx) + g(y1, x1) * wy * wx)


def _ref_conv_bn_relu(x, w, b, gamma, beta, mean, var):
    y = lax.conv_general_dilated(x, w, window_strides=(1, 1),
                                 padding=((1, 1), (1, 1)),
                                 dimension_numbers=("NCHW", "OIHW", "NCHW"))
    y = y + b[None, :, None, None]
    scale = (gamma / jnp.sqrt(var + BN_EPS))[None, :, None, None]
    y = (y - mean[None, :, None, None]) * scale + beta[None, :, None, None]
    return jnp.maximum(y, 0.0)


def _ref_forward(x, params, *, scale_factor):
    _, _, hi, wi = x.shape
    xu = _ref_upsample_bilinear(x, hi * scale_factor, wi * scale_factor)
    h = _ref_conv_bn_relu(xu, params["w1"], params["b1"], params["bn1_gamma"],
                          params["bn1_beta"], params["bn1_mean"], params["bn1_var"])
    return _ref_conv_bn_relu(h, params["w2"], params["b2"], params["bn2_gamma"],
                             params["bn2_beta"], params["bn2_mean"], params["bn2_var"])


# ------------------------------------ main ------------------------------------

if __name__ == "__main__":
    # SeqUpsample(in_channels=4, out_channels=8, scale_factor=2) on a (2,4,16,16) input
    B, C_IN, H, W = 2, 4, 16, 16
    C_OUT, SCALE = 8, 2
    MID = C_IN // 2                      # DoubleConv mid_channels = in_channels // 2

    key = jax.random.PRNGKey(0)
    ks = jax.random.split(key, 13)
    x = jax.random.normal(ks[0], (B, C_IN, H, W), jnp.float32)
    params = {
        "w1": 0.2 * jax.random.normal(ks[1], (MID, C_IN, 3, 3), jnp.float32),
        "b1": 0.1 * jax.random.normal(ks[2], (MID,), jnp.float32),
        "bn1_gamma": 1.0 + 0.1 * jax.random.normal(ks[3], (MID,), jnp.float32),
        "bn1_beta": 0.1 * jax.random.normal(ks[4], (MID,), jnp.float32),
        "bn1_mean": 0.1 * jax.random.normal(ks[5], (MID,), jnp.float32),
        "bn1_var": 0.5 + jnp.abs(jax.random.normal(ks[6], (MID,), jnp.float32)),
        "w2": 0.2 * jax.random.normal(ks[7], (C_OUT, MID, 3, 3), jnp.float32),
        "b2": 0.1 * jax.random.normal(ks[8], (C_OUT,), jnp.float32),
        "bn2_gamma": 1.0 + 0.1 * jax.random.normal(ks[9], (C_OUT,), jnp.float32),
        "bn2_beta": 0.1 * jax.random.normal(ks[10], (C_OUT,), jnp.float32),
        "bn2_mean": 0.1 * jax.random.normal(ks[11], (C_OUT,), jnp.float32),
        "bn2_var": 0.5 + jnp.abs(jax.random.normal(ks[12], (C_OUT,), jnp.float32)),
    }

    y = sequpsample_forward(x, params, scale_factor=SCALE)
    y = jax.block_until_ready(y)

    y_ref = _ref_forward(x, params, scale_factor=SCALE)
    assert y.shape == (B, C_OUT, H * SCALE, W * SCALE)
    assert jnp.allclose(y, y_ref, atol=2e-3, rtol=2e-3), "mismatch vs pure-JAX reference"

    print("KERNEL_OK")
</pallas_src>

<mosaic_0001>
module attributes {stable_mosaic.version = 11 : i64} {
  func.func @_sequpsample_kernel(%arg0: i32, %arg1: memref<1x16x64xf32, #tpu.memory_space<vmem>>, %arg2: memref<34x16xf32, #tpu.memory_space<vmem>>, %arg3: memref<64x136xf32, #tpu.memory_space<vmem>>, %arg4: memref<3x136x68xf32, #tpu.memory_space<vmem>>, %arg5: memref<1x68xf32, #tpu.memory_space<vmem>>, %arg6: memref<3x68x256xf32, #tpu.memory_space<vmem>>, %arg7: memref<1x256xf32, #tpu.memory_space<vmem>>, %arg8: memref<1x32x256xf32, #tpu.memory_space<vmem>>) attributes {dimension_semantics = [#tpu.dimension_semantics<parallel>], iteration_bounds = array<i64: 2>, scalar_prefetch = 0 : i64, scratch_operands = 0 : i64, tpu.core_type = #tpu.core_type<tc>, window_params = [{transform_indices = @transform_0, window_bounds = array<i64: 1, 16, 64>}, {pipeline_mode = #tpu.pipeline_mode<synchronous>, transform_indices = @transform_1, window_bounds = array<i64: 34, 16>}, {pipeline_mode = #tpu.pipeline_mode<synchronous>, transform_indices = @transform_2, window_bounds = array<i64: 64, 136>}, {pipeline_mode = #tpu.pipeline_mode<synchronous>, transform_indices = @transform_3, window_bounds = array<i64: 3, 136, 68>}, {pipeline_mode = #tpu.pipeline_mode<synchronous>, transform_indices = @transform_4, window_bounds = array<i64: 1, 68>}, {pipeline_mode = #tpu.pipeline_mode<synchronous>, transform_indices = @transform_5, window_bounds = array<i64: 3, 68, 256>}, {pipeline_mode = #tpu.pipeline_mode<synchronous>, transform_indices = @transform_6, window_bounds = array<i64: 1, 256>}, {transform_indices = @transform_7, window_bounds = array<i64: 1, 32, 256>}]} {
    %c0 = arith.constant 0 : index
    %c0_0 = arith.constant 0 : index
    %c0_1 = arith.constant 0 : index
    %0 = vector.load %arg1[%c0, %c0_0, %c0_1] : memref<1x16x64xf32, #tpu.memory_space<vmem>>, vector<1x16x64xf32>
    %1 = vector.shape_cast %0 : vector<1x16x64xf32> to vector<16x64xf32>
    %c0_2 = arith.constant 0 : index
    %c0_3 = arith.constant 0 : index
    %2 = vector.load %arg3[%c0_2, %c0_3] : memref<64x136xf32, #tpu.memory_space<vmem>>, vector<64x136xf32>
    %cst = arith.constant dense<0.000000e+00> : vector<16x136xf32>
    %3 = tpu.matmul %1, %2, %cst {dimension_numbers = #tpu.dot_dimension_numbers<[1], [0], [0], [1], [0, 0, 1, 1], [], []>} : vector<16x64xf32>, vector<64x136xf32>, vector<16x136xf32> -> vector<16x136xf32>
    %c0_4 = arith.constant 0 : index
    %c0_5 = arith.constant 0 : index
    %4 = vector.load %arg2[%c0_4, %c0_5] : memref<34x16xf32, #tpu.memory_space<vmem>>, vector<34x16xf32>
    %cst_6 = arith.constant dense<0.000000e+00> : vector<34x136xf32>
    %5 = tpu.matmul %4, %3, %cst_6 {dimension_numbers = #tpu.dot_dimension_numbers<[1], [0], [0], [1], [0, 0, 1, 1], [], []>} : vector<34x16xf32>, vector<16x136xf32>, vector<34x136xf32> -> vector<34x136xf32>
    %c0_7 = arith.constant 0 : index
    %c0_8 = arith.constant 0 : index
    %6 = vector.load %arg5[%c0_7, %c0_8] : memref<1x68xf32, #tpu.memory_space<vmem>>, vector<1x68xf32>
    %7 = vector.extract_strided_slice %5 {offsets = [0, 0], sizes = [32, 136], strides = [1, 1]} : vector<34x136xf32> to vector<32x136xf32>
    %c0_9 = arith.constant 0 : index
    %c0_10 = arith.constant 0 : index
    %c0_11 = arith.constant 0 : index
    %8 = vector.load %arg4[%c0_9, %c0_10, %c0_11] : memref<3x136x68xf32, #tpu.memory_space<vmem>>, vector<1x136x68xf32>
    %9 = vector.shape_cast %8 : vector<1x136x68xf32> to vector<136x68xf32>
    %cst_12 = arith.constant dense<0.000000e+00> : vector<32x68xf32>
    %10 = tpu.matmul %7, %9, %cst_12 {dimension_numbers = #tpu.dot_dimension_numbers<[1], [0], [0], [1], [0, 0, 1, 1], [], []>} : vector<32x136xf32>, vector<136x68xf32>, vector<32x68xf32> -> vector<32x68xf32>
    %11 = vector.broadcast %6 : vector<1x68xf32> to vector<32x68xf32>
    %12 = arith.addf %11, %10 : vector<32x68xf32>
    %13 = vector.extract_strided_slice %5 {offsets = [1, 0], sizes = [32, 136], strides = [1, 1]} : vector<34x136xf32> to vector<32x136xf32>
    %c1 = arith.constant 1 : index
    %c0_13 = arith.constant 0 : index
    %c0_14 = arith.constant 0 : index
    %14 = vector.load %arg4[%c1, %c0_13, %c0_14] : memref<3x136x68xf32, #tpu.memory_space<vmem>>, vector<1x136x68xf32>
    %15 = vector.shape_cast %14 : vector<1x136x68xf32> to vector<136x68xf32>
    %cst_15 = arith.constant dense<0.000000e+00> : vector<32x68xf32>
    %16 = tpu.matmul %13, %15, %cst_15 {dimension_numbers = #tpu.dot_dimension_numbers<[1], [0], [0], [1], [0, 0, 1, 1], [], []>} : vector<32x136xf32>, vector<136x68xf32>, vector<32x68xf32> -> vector<32x68xf32>
    %17 = arith.addf %12, %16 : vector<32x68xf32>
    %18 = vector.extract_strided_slice %5 {offsets = [2, 0], sizes = [32, 136], strides = [1, 1]} : vector<34x136xf32> to vector<32x136xf32>
    %c2 = arith.constant 2 : index
    %c0_16 = arith.constant 0 : index
    %c0_17 = arith.constant 0 : index
    %19 = vector.load %arg4[%c2, %c0_16, %c0_17] : memref<3x136x68xf32, #tpu.memory_space<vmem>>, vector<1x136x68xf32>
    %20 = vector.shape_cast %19 : vector<1x136x68xf32> to vector<136x68xf32>
    %cst_18 = arith.constant dense<0.000000e+00> : vector<32x68xf32>
    %21 = tpu.matmul %18, %20, %cst_18 {dimension_numbers = #tpu.dot_dimension_numbers<[1], [0], [0], [1], [0, 0, 1, 1], [], []>} : vector<32x136xf32>, vector<136x68xf32>, vector<32x68xf32> -> vector<32x68xf32>
    %22 = arith.addf %17, %21 : vector<32x68xf32>
    %cst_19 = arith.constant 0.000000e+00 : f32
    %23 = vector.broadcast %cst_19 : f32 to vector<32x68xf32>
    %24 = arith.maximumf %22, %23 : vector<32x68xf32>
    %cst_20 = arith.constant 0.000000e+00 : f32
    %25 = vector.broadcast %cst_20 : f32 to vector<1x68xf32>
    %26 = tpu.concatenate %25, %24, %25 in 0 : vector<1x68xf32>, vector<32x68xf32>, vector<1x68xf32> -> vector<34x68xf32>
    %c0_21 = arith.constant 0 : index
    %c0_22 = arith.constant 0 : index
    %27 = vector.load %arg7[%c0_21, %c0_22] : memref<1x256xf32, #tpu.memory_space<vmem>>, vector<1x256xf32>
    %28 = vector.extract_strided_slice %26 {offsets = [0, 0], sizes = [32, 68], strides = [1, 1]} : vector<34x68xf32> to vector<32x68xf32>
    %c0_23 = arith.constant 0 : index
    %c0_24 = arith.constant 0 : index
    %c0_25 = arith.constant 0 : index
    %29 = vector.load %arg6[%c0_23, %c0_24, %c0_25] : memref<3x68x256xf32, #tpu.memory_space<vmem>>, vector<1x68x256xf32>
    %30 = vector.shape_cast %29 : vector<1x68x256xf32> to vector<68x256xf32>
    %cst_26 = arith.constant dense<0.000000e+00> : vector<32x256xf32>
    %31 = tpu.matmul %28, %30, %cst_26 {dimension_numbers = #tpu.dot_dimension_numbers<[1], [0], [0], [1], [0, 0, 1, 1], [], []>} : vector<32x68xf32>, vector<68x256xf32>, vector<32x256xf32> -> vector<32x256xf32>
    %32 = vector.broadcast %27 : vector<1x256xf32> to vector<32x256xf32>
    %33 = arith.addf %32, %31 : vector<32x256xf32>
    %34 = vector.extract_strided_slice %26 {offsets = [1, 0], sizes = [32, 68], strides = [1, 1]} : vector<34x68xf32> to vector<32x68xf32>
    %c1_27 = arith.constant 1 : index
    %c0_28 = arith.constant 0 : index
    %c0_29 = arith.constant 0 : index
    %35 = vector.load %arg6[%c1_27, %c0_28, %c0_29] : memref<3x68x256xf32, #tpu.memory_space<vmem>>, vector<1x68x256xf32>
    %36 = vector.shape_cast %35 : vector<1x68x256xf32> to vector<68x256xf32>
    %cst_30 = arith.constant dense<0.000000e+00> : vector<32x256xf32>
    %37 = tpu.matmul %34, %36, %cst_30 {dimension_numbers = #tpu.dot_dimension_numbers<[1], [0], [0], [1], [0, 0, 1, 1], [], []>} : vector<32x68xf32>, vector<68x256xf32>, vector<32x256xf32> -> vector<32x256xf32>
    %38 = arith.addf %33, %37 : vector<32x256xf32>
    %39 = vector.extract_strided_slice %26 {offsets = [2, 0], sizes = [32, 68], strides = [1, 1]} : vector<34x68xf32> to vector<32x68xf32>
    %c2_31 = arith.constant 2 : index
    %c0_32 = arith.constant 0 : index
    %c0_33 = arith.constant 0 : index
    %40 = vector.load %arg6[%c2_31, %c0_32, %c0_33] : memref<3x68x256xf32, #tpu.memory_space<vmem>>, vector<1x68x256xf32>
    %41 = vector.shape_cast %40 : vector<1x68x256xf32> to vector<68x256xf32>
    %cst_34 = arith.constant dense<0.000000e+00> : vector<32x256xf32>
    %42 = tpu.matmul %39, %41, %cst_34 {dimension_numbers = #tpu.dot_dimension_numbers<[1], [0], [0], [1], [0, 0, 1, 1], [], []>} : vector<32x68xf32>, vector<68x256xf32>, vector<32x256xf32> -> vector<32x256xf32>
    %43 = arith.addf %38, %42 : vector<32x256xf32>
    %cst_35 = arith.constant 0.000000e+00 : f32
    %44 = vector.broadcast %cst_35 : f32 to vector<32x256xf32>
    %45 = arith.maximumf %43, %44 : vector<32x256xf32>
    %c0_36 = arith.constant 0 : index
    %c0_37 = arith.constant 0 : index
    %c0_38 = arith.constant 0 : index
    %46 = vector.load %arg8[%c0_36, %c0_37, %c0_38] : memref<1x32x256xf32, #tpu.memory_space<vmem>>, vector<1x32x256xf32>
    %47 = vector.shape_cast %46 : vector<1x32x256xf32> to vector<32x256xf32>
    %48 = vector.shape_cast %45 : vector<32x256xf32> to vector<1x32x256xf32>
    tpu.vector_store %arg8[%c0_36, %c0_37, %c0_38], %48 {strides = array<i32>} : memref<1x32x256xf32, #tpu.memory_space<vmem>>, vector<1x32x256xf32>,
    return
  }
  func.func @transform_0(%arg0: i32) -> (i32, i32, i32) {
    %c0_i32 = arith.constant 0 : i32
    %c0_i32_0 = arith.constant 0 : i32
    %c0_i32_1 = arith.constant 0 : i32
    return %arg0, %c0_i32, %c0_i32_0 : i32, i32, i32
  }
  func.func @transform_1(%arg0: i32) -> (i32, i32) {
    %c0_i32 = arith.constant 0 : i32
    %c0_i32_0 = arith.constant 0 : i32
    %c0_i32_1 = arith.constant 0 : i32
    return %c0_i32, %c0_i32_0 : i32, i32
  }
  func.func @transform_2(%arg0: i32) -> (i32, i32) {
    %c0_i32 = arith.constant 0 : i32
    %c0_i32_0 = arith.constant 0 : i32
    %c0_i32_1 = arith.constant 0 : i32
    return %c0_i32, %c0_i32_0 : i32, i32
  }
  func.func @transform_3(%arg0: i32) -> (i32, i32, i32) {
    %c0_i32 = arith.constant 0 : i32
    %c0_i32_0 = arith.constant 0 : i32
    %c0_i32_1 = arith.constant 0 : i32
    %c0_i32_2 = arith.constant 0 : i32
    return %c0_i32, %c0_i32_0, %c0_i32_1 : i32, i32, i32
  }
  func.func @transform_4(%arg0: i32) -> (i32, i32) {
    %c0_i32 = arith.constant 0 : i32
    %c0_i32_0 = arith.constant 0 : i32
    %c0_i32_1 = arith.constant 0 : i32
    return %c0_i32, %c0_i32_0 : i32, i32
  }
  func.func @transform_5(%arg0: i32) -> (i32, i32, i32) {
    %c0_i32 = arith.constant 0 : i32
    %c0_i32_0 = arith.constant 0 : i32
    %c0_i32_1 = arith.constant 0 : i32
    %c0_i32_2 = arith.constant 0 : i32
    return %c0_i32, %c0_i32_0, %c0_i32_1 : i32, i32, i32
  }
  func.func @transform_6(%arg0: i32) -> (i32, i32) {
    %c0_i32 = arith.constant 0 : i32
    %c0_i32_0 = arith.constant 0 : i32
    %c0_i32_1 = arith.constant 0 : i32
    return %c0_i32, %c0_i32_0 : i32, i32
  }
  func.func @transform_7(%arg0: i32) -> (i32, i32, i32) {
    %c0_i32 = arith.constant 0 : i32
    %c0_i32_0 = arith.constant 0 : i32
    %c0_i32_1 = arith.constant 0 : i32
    return %arg0, %c0_i32, %c0_i32_0 : i32, i32, i32
  }
}

</mosaic_0001>

<bundles_post_ra>
// kernel: tpu_custom_call.1
= control target key start
LH: loop header
LB: loop body
LE: loop exit
PB: predicated region body
PF: predicated region fallthrough
CT: control target
= control target key end

     0   :  { %s1914_s0 = inlined_call_operand.vmem [shape: f32[2,16,64], index: 0, kind: input, shape index: {}]   ;;  %s1915_s1 = inlined_call_operand.vmem [shape: f32[34,16], index: 1, kind: input, shape index: {}]   ;;  %s1916_s2 = inlined_call_operand.hbm [shape: f32[64,136], index: 2, kind: input, shape index: {}]   ;;  %s1917_s3 = inlined_call_operand.hbm [shape: f32[3,136,68], index: 3, kind: input, shape index: {}]   ;;  %s1918_s4 = inlined_call_operand.vmem [shape: f32[1,68], index: 4, kind: input, shape index: {}]   ;;  %s1919_s5 = inlined_call_operand.hbm [shape: f32[3,68,256], index: 5, kind: input, shape index: {}]   ;;  %s1920_s6 = inlined_call_operand.vmem [shape: f32[1,256], index: 6, kind: input, shape index: {}]   ;;  %s1921_s7 = inlined_call_operand.hbm [shape: f32[2,32,256], index: 7, kind: output, shape index: {}]  }
   0x1   :  { %1922 = sst [smem:[#allocation12_spill]] %s1916_s2 }
   0x2   :  { %1923 = sst [smem:[#allocation13_spill]] %s1917_s3 }
   0x3   :  { %12 = vsyncpa [#allocation3], 0 }
   0x4   :  { %13 = vsyncpa [#allocation6], 0 }
   0x5   :  { %14 = vsyncpa [#allocation4], 0 }
   0x6   :  { %16 = vsyncpa [#allocation4 + $0x1], 0  ;;  %s1644_s24 = smov 0   ;;  %s1646_s25 = smov 0  }
   0x7   :  { %s1648_s26 = smov 0   ;;  %s1650_s27 = smov 0  }
   0x8 LB: > { %s1665_s28 = sadd.s32 4294967295, %s1593_s27   ;;  %s1276_s29 = sadd.s32 4294967294, %s1593_s27   ;;  %s1593_s27 = sphi %s1650_s27, %s1933_s27   ;;  %s1589_s26 = sphi %s1648_s26, %s1932_s26   ;;  %s1585_s25 = sphi %s1646_s25, %s1931_s25   ;;  %s1581_s24 = sphi %s1644_s24, %s1930_s24  }
   0x9   : > { %s1669_s30 = sadd.s32 1, %s1593_s27   ;;  %s181_s8 = sadd.s32 1, %s1589_s26 }
   0xa   : > { %s178_s9 = ssub.s32 %s1593_s27, %s1669_s30  ;;  %p191_p0 = scmp.ne.s32.totalorder %s1589_s26, %s1585_s25 }
   0xb   : > { %p179_p1 = scmp.eq.s32.totalorder %s178_s9, 0  ;;  %p192_p2 = scmp.eq.s32.totalorder %s1665_s28, 1 }
   0xc   : > { %p197_p3 = scmp.ne.s32.totalorder %s1585_s25, %s1581_s24  ;;  %p198_p4 = scmp.eq.s32.totalorder %s1276_s29, 1 }
   0xd   : > { %s1680_s10 = scalar_select %p179_p1, %s1589_s26, %s181_s8  }
   0xe   : > { %p1682_p5 = por %p192_p2, %p191_p0  ;;  %p1686_p6 = por %p198_p4, %p197_p3 }
   0xf   : > { %p1277_p7 = scmp.ge.s32.totalorder %s1593_s27, 1  ;;  %p205_p8 = scmp.lt.s32.totalorder %s1593_s27, 3 }
  0x10   : > { %p1384_p9 = scmp.eq.s32.totalorder %s1665_s28, 0  ;;  %s1927_s3 = sld [smem:[#allocation13_spill]] }
  0x11   : > { %p1693_p10 = pnand %p1277_p7, %p205_p8  ;;  %s1595_s17 = smov [#allocation5]  }
  0x12   : > { %s235_s18 = sshll.u32 %s1595_s17, 4  ;;  %s1929_s2 = sld [smem:[#allocation12_spill]]  ;;  %s236_s18 = int_to_ptr.vmem [resolvable:$true] %s235_s18 }
  0x13   : > { %p1370_p11 = pneg %p1693_p10  ;;  %s1596_s23 = smov 128  }
  0x14   : > { %s1597_s29 = smov 8   ;;  %s1598_s8 = smov [#allocation2]  }
  0x15   : > { %p1704_p12 = pnand %p1384_p9, %p1370_p11  ;;  %s221_s9 = sshll.u32 %s1598_s8, 4  ;;  %s222_s9 = int_to_ptr.vmem [resolvable:$true] %s221_s9 }
  0x16   : > { %s233_s16 = sshll.u32 %s1927_s3, 4  ;;  %s1599_s14 = smov 256   ;;  %s234_s16 = int_to_ptr.hbm [resolvable:$true] %s233_s16 }
  0x17   : > { %1376 = dma.hbm_to_vmem [thread:$0]  (!%p1704_p12), %s234_s16, 6528, %s236_s18, [#allocation6], %s1596_s23, %s1596_s23, %s1597_s29  }
  0x18   : > { %s219_s22 = sshll.u32 %s1929_s2, 4  ;;  %s1600_s15 = smov 16   ;;  %s220_s22 = int_to_ptr.hbm [resolvable:$true] %s219_s22 }
  0x19   : > { %1373 = dma.hbm_to_vmem [thread:$0]  (!%p1704_p12), %s220_s22, 2048, %s222_s9, [#allocation3], %s1599_s14, %s1599_s14, %s1600_s15  }
  0x1a   : > { %s250_s20 = sshll.u32 %s1919_s5, 4  ;;  %s1601_s21 = smov [#allocation7]   ;;  %s251_s20 = int_to_ptr.hbm [resolvable:$true] %s250_s20 }
  0x1b   : > { %s252_s2 = sshll.u32 %s1601_s21, 4  ;;  %279 = sbr.rel (%p1693_p10) target bundleno = 689 (0x2b1), region = 48  ;;  %s253_s2 = int_to_ptr.vmem [resolvable:$true] %s252_s2 }
  0x1c   : > { %1379 = dma.hbm_to_vmem [thread:$0]  (!%p1704_p12), %s251_s20, 6912, %s253_s2, [#allocation6], %s1599_s14, %s1599_s14, %s1600_s15  }
  0x20   : > { %1568 = dma.done.wait (%p1384_p9), [#allocation3], 2048  }
  0x21   : > { %1570 = vsyncadd (%p1384_p9), [#allocation3], 4294965248 }
  0x22   : > { %1572 = dma.done.wait (%p1384_p9), [#allocation6], 13440  }
  0x23   : > { %1574 = vsyncadd (%p1384_p9), [#allocation6], 4294953856  ;;  %p322_p13 = scmp.lt.s32.totalorder %s1665_s28, 1  ;;  %v343_v0 = vld [vmem:[#allocation2 + $0x70] sm:$0xff]  ;;  %v344_v1 = vld [vmem:[#allocation2 + $0x78] sm:$0xff]  ;;  %vm345_vm0 = vcmask 523264  }
  0x24   : > { %v341_v2 = vld [vmem:[#allocation2 + $0x60] sm:$0xff]  ;;  %360 = vmatpush.msra.mxu0 %v343_v0  ;;  %383 = vmatpush.msra.mxu1 %v344_v1  ;;  %v342_v3 = vld [vmem:[#allocation2 + $0x68] sm:$0xff]  ;;  %v339_v4 = vld [vmem:[#allocation2 + $0x50] sm:$0xff]  ;;  %vm403_vm1 = vcmask 130048   ;;  %vm501_vm2 = vcmask 64512   ;;  %vm603_vm3 = vcmask 1046528  }
  0x25   : > { %v340_v5 = vld [vmem:[#allocation2 + $0x58] sm:$0xff]  ;;  %s323_s2 = scalar_select %p322_p13, %s1665_s28, 1  ;;  %v337_v6 = vld [vmem:[#allocation2 + $0x40] sm:$0xff]  ;;  %v338_v7 = vld [vmem:[#allocation2 + $0x48] sm:$0xff]  ;;  %vm714_vm4 = vcmask 1045504   ;;  %vm856_vm5 = vcmask 1043456  }
  0x26   : > { %361 = vmatpush.msra.mxu0 %v341_v2  ;;  %384 = vmatpush.msra.mxu1 %v342_v3  ;;  %v335_v8 = vld [vmem:[#allocation2 + $0x30] sm:$0xff]  ;;  %v336_v9 = vld [vmem:[#allocation2 + $0x38] sm:$0xff]  ;;  %v333_v10 = vld [vmem:[#allocation2 + $0x20] sm:$0xff]  ;;  %vm815_vm6 = vcmask 1040384   ;;  %vm846_vm7 = vcmask 556032   ;;  %s319_s16 = sand.u32 1, %s1585_s25  }
  0x27   : > { %s1350_s3 = sshll.u32 %s323_s2, 4  ;;  %v334_v11 = vld [vmem:[#allocation2 + $0x28] sm:$0xff]  ;;  %v331_v12 = vld [vmem:[#allocation2 + $0x10] sm:$0xff]  ;;  %v332_v13 = vld [vmem:[#allocation2 + $0x18] sm:$0xff]  ;;  %s1351_s22 = sshll.u32 %s1665_s28, 6 }
  0x28   : > { %362 = vmatpush.msra.mxu0 %v339_v4  ;;  %385 = vmatpush.msra.mxu1 %v340_v5  ;;  %s326_s18 = scalar_lea.vmem %s1914_s0, %s1350_s3  ;;  %v329_v14 = vld [vmem:[#allocation2] sm:$0xff]  ;;  %v330_v15 = vld [vmem:[#allocation2 + $0x8] sm:$0xff]  ;;  %v499_v24 = vld [vmem:[#allocation5 + $0x78] sm:$0xff]  ;;  %s1179_s8 = scalar_lea.hbm %s1921_s7, %s1351_s22 }
  0x29   : > { %v327_v16 = vld [vmem:[%s326_s18] sm:$0xff]  ;;  %v328_v17 = vld [vmem:[%s326_s18 + $0x8] sm:$0xff]  ;;  %v498_v26 = vld [vmem:[#allocation5 + $0x70] sm:$0xff]  ;;  %s1286_s18 = sshll.u32 %s319_s16, 6  ;;  %s1182_s28 = sshll.u32 %s1179_s8, 4  ;;  %s1183_s28 = int_to_ptr.hbm [resolvable:$true] %s1182_s28 }
  0x2a   : > { %363 = vmatpush.msra.mxu0 %v337_v6  ;;  %386 = vmatpush.msra.mxu1 %v338_v7  ;;  %v398_v22 = vld [vmem:[%s1915_s1] sm:$0xff]  ;;  %v399_v23 = vld [vmem:[%s1915_s1 + $0x8] sm:$0xff]  ;;  %v594_v27 = vld [vmem:[#allocation5 + $0xf8] sm:$0xff]  ;;  %s1870_s19 = scalar_lea.vmem [#allocation8], %s1286_s18  ;;  %s1168_s14 = scalar_lea.sflag [#allocation4], %s319_s16 }
  0x2b   : > { %v595_v25 = vld [vmem:[#allocation5 + $0x100] sm:$0xff]  ;;  %v497_v28 = vld [vmem:[#allocation5 + $0x68] sm:$0xff]  ;;  %v593_v29 = vld [vmem:[#allocation5 + $0xf0] sm:$0xff]  ;;  %s1180_s9 = sshll.u32 %s1870_s19, 4  ;;  %s1537_s15 = sshra.s32 %s1183_s28, 4  ;;  %s1181_s9 = int_to_ptr.vmem [resolvable:$true] %s1180_s9  ;;  %s1538_s15 = int_to_ptr.hbm [resolvable:$true] %s1537_s15 }
  0x2c   : > { %364 = vmatpush.msra.mxu0 %v335_v8  ;;  %387 = vmatpush.msra.mxu1 %v336_v9  ;;  %v400_v30 = vld [vmem:[%s1915_s1 + $0x10] sm:$0xff]  ;;  %v592_v31 = vld [vmem:[#allocation5 + $0xe8] sm:$0xff]  ;;  %v496_v32 = vld [vmem:[#allocation5 + $0x60] sm:$0xff]  ;;  %s1539_s17 = scalar_lea.hbm %s1538_s15, 64  ;;  %s1543_s2 = scalar_lea.hbm %s1921_s7, 128 }
  0x2d   : > { %v591_v33 = vld [vmem:[#allocation5 + $0xe0] sm:$0xff]  ;;  %v495_v34 = vld [vmem:[#allocation5 + $0x58] sm:$0xff]  ;;  %v494_v36 = vld [vmem:[#allocation5 + $0x50] sm:$0xff]  ;;  %p1540_p0 = scmp.ne.s32.totalorder %s1538_s15, %s1539_s17  ;;  %p1544_p3 = scmp.lt.s32.totalorder %s1538_s15, %s1921_s7 }
  0x2e   : > { %365 = vmatpush.msra.mxu0 %v333_v10  ;;  %388 = vmatpush.msra.mxu1 %v334_v11  ;;  %v590_v35 = vld [vmem:[#allocation5 + $0xd8] sm:$0xff]  ;;  %v589_v37 = vld [vmem:[#allocation5 + $0xd0] sm:$0xff]  ;;  %v493_v38 = vld [vmem:[#allocation5 + $0x48] sm:$0xff]  ;;  %p1545_p4 = scmp.lt.s32.totalorder %s1543_s2, %s1539_s17 }
  0x2f   : > { %v401_v39 = vld [vmem:[%s1915_s1 + $0x18] sm:$0xff]  ;;  %v588_v40 = vld [vmem:[#allocation5 + $0xc8] sm:$0xff]  ;;  %v492_v41 = vld [vmem:[#allocation5 + $0x40] sm:$0xff]  ;;  %p1541_p1 = pnand %p1540_p0, %p1682_p5 }
  0x30   : > { %366 = vmatpush.msra.mxu0 %v331_v12  ;;  %389 = vmatpush.msra.mxu1 %v332_v13  ;;  %v587_v42 = vld [vmem:[#allocation5 + $0xc0] sm:$0xff]  ;;  %v491_v43 = vld [vmem:[#allocation5 + $0x38] sm:$0xff]  ;;  %v490_v45 = vld [vmem:[#allocation5 + $0x30] sm:$0xff]  ;;  %p1546_p7 = por %p1545_p4, %p1544_p3 }
  0x31   : > { %v586_v44 = vld [vmem:[#allocation5 + $0xb8] sm:$0xff]  ;;  %v585_v46 = vld [vmem:[#allocation5 + $0xb0] sm:$0xff]  ;;  %v489_v47 = vld [vmem:[#allocation5 + $0x28] sm:$0xff]  ;;  %p1542_p2 = pneg %p1541_p1 }
  0x32   : > { %367 = vmatpush.msra.mxu0 %v329_v14  ;;  %390 = vmatpush.msra.mxu1 %v330_v15  ;;  %v402_v48 = vld [vmem:[%s1915_s1 + $0x20] sm:$0x3]  ;;  %v487_v50 = vld [vmem:[#allocation5 + $0x18] sm:$0xff]  ;;  %v486_v51 = vld [vmem:[#allocation5 + $0x10] sm:$0xff] }
  0x33   : > { %1289 = vmatmul.msk.f32.vlgmr.msra.gmra.mxu0 %vm345_vm0, %v327_v16  ;;  %1291 = vmatmul.msk.f32.vlgmr.msra.gmra.mxu1 %vm345_vm0, %v327_v16  ;;  %v488_v49 = vld [vmem:[#allocation5 + $0x20] sm:$0xff]  ;;  %v485_v52 = vld [vmem:[#allocation5 + $0x8] sm:$0xff]  ;;  %v582_v59 = vld [vmem:[#allocation5 + $0x98] sm:$0xff]  ;;  %p1547_p8 = pnand %p1546_p7, %p1542_p2 }
  0x34   : > { %v484_v53 = vld [vmem:[#allocation5] sm:$0xff]  ;;  %v584_v55 = vld [vmem:[#allocation5 + $0xa8] sm:$0xff]  ;;  %v710_v60 = vld [vmem:[#allocation5 + $0x178] sm:$0xff] }
  0x35   : > { %v500_v54 = vld [vmem:[#allocation5 + $0x80] sm:$0xff]  ;;  %v712_v56 = vld [vmem:[#allocation5 + $0x188] sm:$0xff]  ;;  %v581_v61 = vld [vmem:[#allocation5 + $0x90] sm:$0xff] }
  0x36   : > { %v583_v57 = vld [vmem:[#allocation5 + $0xa0] sm:$0xff]  ;;  %v709_v62 = vld [vmem:[#allocation5 + $0x170] sm:$0xff]  ;;  %v580_v63 = vld [vmem:[#allocation5 + $0x88] sm:$0xff] }
  0x37   : > { %v711_v58 = vld [vmem:[#allocation5 + $0x180] sm:$0xff]  ;;  %v596_v0 = vld [vmem:[#allocation5 + $0x108] sm:$0xff]  ;;  %v706_v3 = vld [vmem:[#allocation5 + $0x158] sm:$0xff] }
  0x38   : > { %v708_v1 = vld [vmem:[#allocation5 + $0x168] sm:$0xff]  ;;  %v707_v2 = vld [vmem:[#allocation5 + $0x160] sm:$0xff]  ;;  %v705_v4 = vld [vmem:[#allocation5 + $0x150] sm:$0xff] }
  0x39   : > { %v713_v5 = vld [vmem:[#allocation5 + $0x190] sm:$0xff]  ;;  %v704_v6 = vld [vmem:[#allocation5 + $0x148] sm:$0xff]  ;;  %v703_v7 = vld [vmem:[#allocation5 + $0x140] sm:$0xff] }
  0x3a   : > { %v702_v8 = vld [vmem:[#allocation5 + $0x138] sm:$0xff]  ;;  %v701_v9 = vld [vmem:[#allocation5 + $0x130] sm:$0xff]  ;;  %v700_v10 = vld [vmem:[#allocation5 + $0x128] sm:$0xff] }
  0x3b   : > { %1290 = vmatmul.msk.f32.gmra.mxu0 %vm345_vm0, %v328_v17  ;;  %1292 = vmatmul.msk.f32.gmra.mxu1 %vm345_vm0, %v328_v17  ;;  %v699_v11 = vld [vmem:[#allocation5 + $0x120] sm:$0xff]  ;;  %v698_v12 = vld [vmem:[#allocation5 + $0x118] sm:$0xff]  ;;  %v697_v14 = vld [vmem:[#allocation5 + $0x110] sm:$0xff] }
  0xb0   : > { %v369_v18 = vpop.f32.mrf.mxu0  ;;  %v392_v19 = vpop.f32.mrf.mxu1 }
  0xb8   : > { %v372_v20 = vpop.f32.mrf.mxu0  ;;  %v395_v21 = vpop.f32.mrf.mxu1 }
  0xb9   : > { %433 = vmatpush.msrb.mxu0 %v372_v20  ;;  %1352 = vmatpush.msra.mxu2 %v372_v20 }
  0xba   : > { %465 = vmatpush.msrb.mxu1 %v395_v21  ;;  %1354 = vmatpush.msra.mxu3 %v395_v21 }
  0xbb   : > { %434 = vmatpush.msrb.mxu0 %v369_v18  ;;  %1353 = vmatpush.msra.mxu2 %v369_v18 }
  0xbc   : > { %466 = vmatpush.msrb.mxu1 %v392_v19  ;;  %1355 = vmatpush.msra.mxu3 %v392_v19 }
  0xbd   : > { %1293 = vmatmul.msk.f32.vlgmr.msrb.gmra.mxu0 %vm403_vm1, %v398_v22  ;;  %1294 = vmatmul.msk.f32.vlgmr.msra.gmra.mxu2 %vm403_vm1, %v399_v23 }
  0xbe   : > { %1298 = vmatmul.msk.f32.vlgmr.msrb.gmra.mxu1 %vm403_vm1, %v398_v22  ;;  %1299 = vmatmul.msk.f32.vlgmr.msra.gmra.mxu3 %vm403_vm1, %v399_v23 }
  0xbf   : > { %514 = vmatpush.msrb.mxu2 %v499_v24  ;;  %634 = vmatpush.msrb.mxu3 %v595_v25 }
  0xc0   : > { %558 = vmatpush.msra.mxu0 %v500_v54  ;;  %678 = vmatpush.msra.mxu1 %v596_v0  ;;  %v843_v0 = vld [vmem:[#allocation7 + $0x78] sm:$0xff] }
  0xc1   : > { %515 = vmatpush.msrb.mxu2 %v498_v26  ;;  %635 = vmatpush.msrb.mxu3 %v594_v27 }
  0xc2   : > { %745 = vmatpush.msrb.mxu0 %v712_v56  ;;  %789 = vmatpush.msrb.mxu1 %v713_v5 }
  0xc3   : > { %516 = vmatpush.msrb.mxu2 %v497_v28  ;;  %636 = vmatpush.msrb.mxu3 %v593_v29 }
  0xc4   : > { %746 = vmatpush.msrb.mxu0 %v711_v58 }
  0xc5   : > { %1295 = vmatmul.msk.f32.gmra.mxu2 %vm403_vm1, %v400_v30  ;;  %637 = vmatpush.msrb.mxu3 %v592_v31 }
  0xc6   : > { %1300 = vmatmul.msk.f32.gmra.mxu3 %vm403_vm1, %v400_v30  ;;  %517 = vmatpush.msrb.mxu2 %v496_v32 }
  0xc7   : > { %638 = vmatpush.msrb.mxu3 %v591_v33  ;;  %747 = vmatpush.msrb.mxu0 %v710_v60  ;;  %v844_v60 = vld [vmem:[#allocation7 + $0x80] sm:$0xf] }
  0xc8   : > { %518 = vmatpush.msrb.mxu2 %v495_v34 }
  0xc9   : > { %639 = vmatpush.msrb.mxu3 %v590_v35  ;;  %748 = vmatpush.msrb.mxu0 %v709_v62 }
  0xca   : > { %519 = vmatpush.msrb.mxu2 %v494_v36 }
  0xcb   : > { %640 = vmatpush.msrb.mxu3 %v589_v37  ;;  %749 = vmatpush.msrb.mxu0 %v708_v1  ;;  %v840_v1 = vld [vmem:[#allocation7 + $0x60] sm:$0xff] }
  0xcc   : > { %520 = vmatpush.msrb.mxu2 %v493_v38 }
  0xcd   : > { %1296 = vmatmul.msk.f32.gmra.mxu2 %vm403_vm1, %v401_v39  ;;  %641 = vmatpush.msrb.mxu3 %v588_v40 }
  0xce   : > { %1301 = vmatmul.msk.f32.gmra.mxu3 %vm403_vm1, %v401_v39  ;;  %521 = vmatpush.msrb.mxu2 %v492_v41 }
  0xcf   : > { %642 = vmatpush.msrb.mxu3 %v587_v42  ;;  %750 = vmatpush.msrb.mxu0 %v707_v2  ;;  %v841_v2 = vld [vmem:[#allocation7 + $0x68] sm:$0xff] }
  0xd0   : > { %522 = vmatpush.msrb.mxu2 %v491_v43 }
  0xd1   : > { %643 = vmatpush.msrb.mxu3 %v586_v44  ;;  %751 = vmatpush.msrb.mxu0 %v706_v3  ;;  %v838_v3 = vld [vmem:[#allocation7 + $0x50] sm:$0xff] }
  0xd2   : > { %523 = vmatpush.msrb.mxu2 %v490_v45 }
  0xd3   : > { %644 = vmatpush.msrb.mxu3 %v585_v46  ;;  %752 = vmatpush.msrb.mxu0 %v705_v4  ;;  %v839_v4 = vld [vmem:[#allocation7 + $0x58] sm:$0xff] }
  0xd4   : > { %524 = vmatpush.msrb.mxu2 %v489_v47 }
  0xd5   : > { %1297 = vmatmul.msk.f32.gmra.mxu2 %vm403_vm1, %v402_v48  ;;  %645 = vmatpush.msrb.mxu3 %v584_v55 }
  0xd6   : > { %1302 = vmatmul.msk.f32.gmra.mxu3 %vm403_vm1, %v402_v48  ;;  %525 = vmatpush.msrb.mxu2 %v488_v49 }
  0xd7   : > { %646 = vmatpush.msrb.mxu3 %v583_v57  ;;  %753 = vmatpush.msrb.mxu0 %v704_v6 }
  0xd8   : > { %526 = vmatpush.msrb.mxu2 %v487_v50 }
  0xd9   : > { %647 = vmatpush.msrb.mxu3 %v582_v59  ;;  %754 = vmatpush.msrb.mxu0 %v703_v7  ;;  %v836_v7 = vld [vmem:[#allocation7 + $0x40] sm:$0xff] }
  0xda   : > { %527 = vmatpush.msrb.mxu2 %v486_v51 }
  0xdb   : > { %648 = vmatpush.msrb.mxu3 %v581_v61  ;;  %755 = vmatpush.msrb.mxu0 %v702_v8  ;;  %v845_v61 = vld [vmem:[#allocation7 + $0x88] sm:$0xf] }
  0xdc   : > { %528 = vmatpush.msrb.mxu2 %v485_v52  ;;  %v837_v8 = vld [vmem:[#allocation7 + $0x48] sm:$0xff] }
  0xdd   : > { %649 = vmatpush.msrb.mxu3 %v580_v63  ;;  %756 = vmatpush.msrb.mxu0 %v701_v9  ;;  %v842_v63 = vld [vmem:[#allocation7 + $0x70] sm:$0xff] }
  0xde   : > { %529 = vmatpush.msrb.mxu2 %v484_v53  ;;  %v834_v9 = vld [vmem:[#allocation7 + $0x30] sm:$0xff] }
  0xdf   : > { %757 = vmatpush.msrb.mxu0 %v700_v10  ;;  %1320 = vmatpush.msk.msra.mxu3 %vm856_vm5, %v845_v61  ;;  %v835_v10 = vld [vmem:[#allocation7 + $0x38] sm:$0xff] }
  0xe0   : > { %1315 = vmatpush.msk.msra.mxu2 %vm856_vm5, %v844_v60 }
  0xe1   : > { %758 = vmatpush.msrb.mxu0 %v699_v11  ;;  %900 = vmatpush.msra.mxu3 %v843_v0  ;;  %v951_v11 = vld [vmem:[#allocation7 + $0x110] sm:$0xf] }
  0xe2   : > { %871 = vmatpush.msra.mxu2 %v842_v63  ;;  %v1051_v63 = vld [vmem:[#allocation7 + $0x158] sm:$0xff] }
  0xe3   : > { %759 = vmatpush.msrb.mxu0 %v698_v12  ;;  %901 = vmatpush.msra.mxu3 %v841_v2  ;;  %v952_v12 = vld [vmem:[#allocation7 + $0x118] sm:$0xf] }
  0xe4   : > { %872 = vmatpush.msra.mxu2 %v840_v1 }
  0xe5   : > { %760 = vmatpush.msrb.mxu0 %v697_v14  ;;  %902 = vmatpush.msra.mxu3 %v839_v4  ;;  %v833_v14 = vld [vmem:[#allocation7 + $0x28] sm:$0xff] }
  0xe6   : > { %873 = vmatpush.msra.mxu2 %v838_v3  ;;  %v1048_v3 = vld [vmem:[#allocation7 + $0x140] sm:$0xff]  ;;  %v1049_v4 = vld [vmem:[#allocation7 + $0x148] sm:$0xff] }
  0xe7   : > { %903 = vmatpush.msra.mxu3 %v837_v8  ;;  %v1046_v8 = vld [vmem:[#allocation7 + $0x130] sm:$0xff] }
  0xe8   : > { %874 = vmatpush.msra.mxu2 %v836_v7 }
  0xe9   : > { %904 = vmatpush.msra.mxu3 %v835_v10 }
  0xea   : > { %875 = vmatpush.msra.mxu2 %v834_v9  ;;  %v1047_v9 = vld [vmem:[#allocation7 + $0x138] sm:$0xff] }
  0xeb   : > { %905 = vmatpush.msra.mxu3 %v833_v14 }
 0x13a   : > { %v436_v13 = vpop.f32.mrf.mxu0 }
 0x13b   : > { %v468_v15 = vpop.f32.mrf.mxu1  ;;  %530 = vmatmul.f32.vlgmr.msrb.gmra.mxu2 %v436_v13  ;;  %v604_v16 = vrot.slane %v436_v13, 1  ;;  %v715_v36 = vrot.slane %v436_v13, 2  ;;  %v832_v13 = vld [vmem:[#allocation7 + $0x20] sm:$0xff] }
 0x13c   : > { %1303 = vmatmul.msk.f32.vlgmr.msra.gmra.mxu0 %vm501_vm2, %v468_v15  ;;  %v607_v17 = vrot.slane %v468_v15, 1  ;;  %v718_v46 = vrot.slane %v468_v15, 2  ;;  %876 = vmatpush.msra.mxu2 %v832_v13  ;;  %v949_v15 = vld [vmem:[#allocation7 + $0x100] sm:$0xff] }
 0x13d   : > { %1325 = vmatpush.msk.msra.mxu0 %vm856_vm5, %v951_v11  ;;  %v1044_v11 = vld [vmem:[#allocation7 + $0x120] sm:$0xff] }
 0x13f   : > { %985 = vmatpush.msra.mxu0 %v949_v15 }
 0x140   : > { %v439_v18 = vpop.f32.mrf.mxu2 }
 0x141   : > { %v605_v19 = vrot.slane %v439_v18, 1  ;;  %v471_v20 = vpop.f32.mrf.mxu3  ;;  %v716_v37 = vrot.slane %v439_v18, 2 }
 0x142   : > { %v608_v21 = vrot.slane %v471_v20, 1  ;;  %v719_v47 = vrot.slane %v471_v20, 2 }
 0x143   : > { %533 = vmatmul.f32.gmra.mxu2 %v439_v18  ;;  %v606_v22 = vsel %vm603_vm3, %v604_v16, %v605_v19  ;;  %v717_v41 = vsel %vm714_vm4, %v715_v36, %v716_v37  ;;  %v950_v16 = vld [vmem:[#allocation7 + $0x108] sm:$0xff]  ;;  %v831_v18 = vld [vmem:[#allocation7 + $0x18] sm:$0xff] }
 0x144   : > { %1304 = vmatmul.msk.f32.gmra.mxu0 %vm501_vm2, %v471_v20  ;;  %650 = vmatmul.f32.vlgmr.msrb.gmra.mxu3 %v606_v22  ;;  %v609_v23 = vsel %vm603_vm3, %v607_v17, %v608_v21  ;;  %v720_v49 = vsel %vm714_vm4, %v718_v46, %v719_v47  ;;  %v830_v17 = vld [vmem:[#allocation7 + $0x10] sm:$0xff]  ;;  %v938_v36 = vld [vmem:[#allocation7 + $0xa8] sm:$0xff] }
 0x145   : > { %1307 = vmatmul.msk.f32.vlgmr.msra.gmra.mxu1 %vm501_vm2, %v609_v23  ;;  %877 = vmatpush.msra.mxu2 %v830_v17  ;;  %v947_v20 = vld [vmem:[#allocation7 + $0xf0] sm:$0xff]  ;;  %v828_v23 = vld [vmem:[#allocation7] sm:$0xff] }
 0x146   : > { %1330 = vmatpush.msk.msra.mxu1 %vm856_vm5, %v952_v12  ;;  %906 = vmatpush.msra.mxu3 %v831_v18  ;;  %v1045_v12 = vld [vmem:[#allocation7 + $0x128] sm:$0xff] }
 0x147   : > { %986 = vmatpush.msra.mxu0 %v947_v20  ;;  %878 = vmatpush.msra.mxu2 %v828_v23 }
 0x148   : > { %v442_v24 = vpop.f32.mrf.mxu2  ;;  %1014 = vmatpush.msra.mxu1 %v950_v16 }
 0x149   : > { %v610_v25 = vrot.slane %v442_v24, 1  ;;  %v474_v26 = vpop.f32.mrf.mxu3  ;;  %v721_v45 = vrot.slane %v442_v24, 2 }
 0x14a   : > { %v612_v27 = vrot.slane %v474_v26, 1  ;;  %v723_v51 = vrot.slane %v474_v26, 2 }
 0x14b   : > { %536 = vmatmul.f32.gmra.mxu2 %v442_v24  ;;  %v611_v28 = vsel %vm603_vm3, %v605_v19, %v610_v25  ;;  %v722_v48 = vsel %vm714_vm4, %v716_v37, %v721_v45  ;;  %v829_v24 = vld [vmem:[#allocation7 + $0x8] sm:$0xff] }
 0x14c   : > { %1305 = vmatmul.msk.f32.gmra.mxu0 %vm501_vm2, %v474_v26  ;;  %653 = vmatmul.f32.gmra.mxu3 %v611_v28  ;;  %v613_v29 = vsel %vm603_vm3, %v608_v21, %v612_v27  ;;  %v724_v53 = vsel %vm714_vm4, %v719_v47, %v723_v51  ;;  %v948_v21 = vld [vmem:[#allocation7 + $0xf8] sm:$0xff]  ;;  %v946_v26 = vld [vmem:[#allocation7 + $0xe8] sm:$0xff] }
 0x14d   : > { %1308 = vmatmul.msk.f32.gmra.mxu1 %vm501_vm2, %v613_v29  ;;  %907 = vmatpush.msra.mxu3 %v829_v24  ;;  %v944_v28 = vld [vmem:[#allocation7 + $0xd8] sm:$0xff]  ;;  %v941_v29 = vld [vmem:[#allocation7 + $0xc0] sm:$0xff] }
 0x14e   : > { %1015 = vmatpush.msra.mxu1 %v948_v21 }
 0x150   : > { %v445_v30 = vpop.f32.mrf.mxu2  ;;  %1016 = vmatpush.msra.mxu1 %v946_v26 }
 0x151   : > { %v614_v31 = vrot.slane %v445_v30, 1  ;;  %v477_v32 = vpop.f32.mrf.mxu3  ;;  %v725_v50 = vrot.slane %v445_v30, 2 }
 0x152   : > { %v616_v33 = vrot.slane %v477_v32, 1  ;;  %v727_v55 = vrot.slane %v477_v32, 2  ;;  %1017 = vmatpush.msra.mxu1 %v944_v28 }
 0x153   : > { %539 = vmatmul.f32.gmra.mxu2 %v445_v30  ;;  %v615_v34 = vsel %vm603_vm3, %v610_v25, %v614_v31  ;;  %v726_v52 = vsel %vm714_vm4, %v721_v45, %v725_v50  ;;  %v945_v25 = vld [vmem:[#allocation7 + $0xe0] sm:$0xff]  ;;  %v942_v30 = vld [vmem:[#allocation7 + $0xc8] sm:$0xff]  ;;  %v1059_v45 = vld [vmem:[#allocation7 + $0x198] sm:$0xff] }
 0x154   : > { %1306 = vmatmul.msk.f32.gmra.mxu0 %vm501_vm2, %v477_v32  ;;  %656 = vmatmul.f32.gmra.mxu3 %v615_v34  ;;  %v617_v35 = vsel %vm603_vm3, %v612_v27, %v616_v33  ;;  %v728_v57 = vsel %vm714_vm4, %v723_v51, %v727_v55  ;;  %v943_v27 = vld [vmem:[#allocation7 + $0xd0] sm:$0xff]  ;;  %v940_v32 = vld [vmem:[#allocation7 + $0xb8] sm:$0xff]  ;;  %v1057_v51 = vld [vmem:[#allocation7 + $0x188] sm:$0xff] }
 0x155   : > { %1309 = vmatmul.msk.f32.gmra.mxu1 %vm501_vm2, %v617_v35  ;;  %987 = vmatpush.msra.mxu0 %v945_v25  ;;  %v937_v35 = vld [vmem:[#allocation7 + $0xa0] sm:$0xff] }
 0x156   : > { %1018 = vmatpush.msra.mxu1 %v942_v30 }
 0x157   : > { %988 = vmatpush.msra.mxu0 %v943_v27 }
 0x158   : > { %v448_v38 = vpop.f32.mrf.mxu2  ;;  %1019 = vmatpush.msra.mxu1 %v940_v32 }
 0x159   : > { %v618_v39 = vrot.slane %v448_v38, 1  ;;  %v480_v40 = vpop.f32.mrf.mxu3  ;;  %v729_v54 = vrot.slane %v448_v38, 2  ;;  %989 = vmatpush.msra.mxu0 %v941_v29  ;;  %v935_v38 = vld [vmem:[#allocation7 + $0x90] sm:$0xff] }
 0x15a   : > { %v620_v42 = vrot.slane %v480_v40, 1  ;;  %v731_v58 = vrot.slane %v480_v40, 2  ;;  %1020 = vmatpush.msra.mxu1 %v938_v36 }
 0x15b   : > { %v619_v43 = vsel %vm603_vm3, %v614_v31, %v618_v39  ;;  %v730_v56 = vsel %vm714_vm4, %v725_v50, %v729_v54  ;;  %v939_v31 = vld [vmem:[#allocation7 + $0xb0] sm:$0xff]  ;;  %v936_v39 = vld [vmem:[#allocation7 + $0x98] sm:$0xff]  ;;  %v1056_v50 = vld [vmem:[#allocation7 + $0x180] sm:$0xff] }
 0x15c   : > { %761 = vmatmul.f32.vlgmr.msrb.gmra.mxu0 %v717_v41  ;;  %659 = vmatmul.f32.gmra.mxu3 %v619_v43  ;;  %v621_v44 = vsel %vm603_vm3, %v616_v33, %v620_v42  ;;  %v732_v59 = vsel %vm714_vm4, %v727_v55, %v731_v58  ;;  %v1060_v41 = vld [vmem:[#allocation7 + $0x1a0] sm:$0xf]  ;;  %v1061_v42 = vld [vmem:[#allocation7 + $0x1a8] sm:$0xf]  ;;  %v1058_v43 = vld [vmem:[#allocation7 + $0x190] sm:$0xff] }
 0x15d   : > { %1310 = vmatmul.msk.f32.gmra.mxu1 %vm501_vm2, %v621_v44  ;;  %990 = vmatpush.msra.mxu0 %v939_v31  ;;  %v1054_v54 = vld [vmem:[#allocation7 + $0x170] sm:$0xff]  ;;  %v1055_v55 = vld [vmem:[#allocation7 + $0x178] sm:$0xff]  ;;  %v1052_v58 = vld [vmem:[#allocation7 + $0x160] sm:$0xff] }
 0x15e   : > { %1021 = vmatpush.msra.mxu1 %v936_v39  ;;  %1335 = vmatpush.msk.msrb.mxu2 %vm856_vm5, %v1060_v41 }
 0x15f   : > { %991 = vmatpush.msra.mxu0 %v937_v35  ;;  %1340 = vmatpush.msk.msrb.mxu3 %vm856_vm5, %v1061_v42 }
 0x160   : > { %1093 = vmatpush.msrb.mxu2 %v1058_v43 }
 0x161   : > { %992 = vmatpush.msra.mxu0 %v935_v38  ;;  %1122 = vmatpush.msrb.mxu3 %v1059_v45 }
 0x162   : > { %1094 = vmatpush.msrb.mxu2 %v1056_v50 }
 0x163   : > { %1123 = vmatpush.msrb.mxu3 %v1057_v51 }
 0x164   : > { %764 = vmatmul.f32.gmra.mxu0 %v722_v48  ;;  %v1814_v48 = vld [vmem:[%s1918_s4] ss:$0 sm:$0xff]  ;;  %1095 = vmatpush.msrb.mxu2 %v1054_v54 }
 0x165   : > { %1311 = vmatmul.msk.f32.vlgmr.msrb.gmra.mxu1 %vm501_vm2, %v720_v49  ;;  %1124 = vmatpush.msrb.mxu3 %v1055_v55 }
 0x166   : > { %1096 = vmatpush.msrb.mxu2 %v1052_v58 }
 0x16c   : > { %767 = vmatmul.f32.gmra.mxu0 %v726_v52 }
 0x16d   : > { %1312 = vmatmul.msk.f32.gmra.mxu1 %vm501_vm2, %v724_v53 }
 0x174   : > { %770 = vmatmul.f32.gmra.mxu0 %v730_v56 }
 0x175   : > { %1313 = vmatmul.msk.f32.gmra.mxu1 %vm501_vm2, %v728_v57 }
 0x17d   : > { %1314 = vmatmul.msk.f32.gmra.mxu1 %vm501_vm2, %v732_v59  ;;  %v1053_v59 = vld [vmem:[#allocation7 + $0x168] sm:$0xff] }
 0x17e   : > { %1125 = vmatpush.msrb.mxu3 %v1053_v59 }
 0x180   : > { %1126 = vmatpush.msrb.mxu3 %v1051_v63 }
 0x182   : > { %1127 = vmatpush.msrb.mxu3 %v1049_v4 }
 0x184   : > { %1128 = vmatpush.msrb.mxu3 %v1047_v9 }
 0x186   : > { %1129 = vmatpush.msrb.mxu3 %v1045_v12 }
 0x1b9   : > { %v1790_v62 = vpop.f32.mrf.mxu0 }
 0x1be   : > { %v531_v37 = vpop.f32.mrf.mxu2 }
 0x1bf   : > { %v561_v47 = vadd.f32 %v1790_v62, %v531_v37  ;;  %v1050_v62 = vld [vmem:[#allocation7 + $0x150] sm:$0xff] }
 0x1c0   : > { %1097 = vmatpush.msrb.mxu2 %v1050_v62 }
 0x1c1   : > { %v1792_v5 = vpop.f32.mrf.mxu0  ;;  %v575_v56 = vadd.f32 %v1814_v48, %v561_v47 }
 0x1c2   : > { %v1794_v6 = vpop.f32.mrf.mxu1  ;;  %1098 = vmatpush.msrb.mxu2 %v1048_v3 }
 0x1c4   : > { %1099 = vmatpush.msrb.mxu2 %v1046_v8 }
 0x1c6   : > { %v534_v49 = vpop.f32.mrf.mxu2  ;;  %1100 = vmatpush.msrb.mxu2 %v1044_v11  ;;  %v827_v11 = vld [vmem:[%s1920_s6] sm:$0x3] }
 0x1c7   : > { %v651_v40 = vpop.f32.mrf.mxu3  ;;  %v564_v0 = vadd.f32 %v1792_v5, %v534_v49 }
 0x1c8   : > { %v681_v52 = vadd.f32 %v1794_v6, %v651_v40 }
 0x1c9   : > { %v1798_v19 = vpop.f32.mrf.mxu0  ;;  %v576_v13 = vadd.f32 %v1814_v48, %v564_v0 }
 0x1ca   : > { %v1800_v22 = vpop.f32.mrf.mxu1  ;;  %v692_v60 = vadd.f32 %v681_v52, %v575_v56 }
 0x1ce   : > { %v537_v10 = vpop.f32.mrf.mxu2 }
 0x1cf   : > { %v654_v53 = vpop.f32.mrf.mxu3  ;;  %v567_v20 = vadd.f32 %v1798_v19, %v537_v10 }
 0x1d0   : > { %v684_v6 = vadd.f32 %v1800_v22, %v654_v53 }
 0x1d1   : > { %v1802_v33 = vpop.f32.mrf.mxu0  ;;  %v577_v25 = vadd.f32 %v1814_v48, %v567_v20 }
 0x1d2   : > { %v1804_v34 = vpop.f32.mrf.mxu1  ;;  %v693_v16 = vadd.f32 %v684_v6, %v576_v13 }
 0x1d6   : > { %v540_v27 = vpop.f32.mrf.mxu2 }
 0x1d7   : > { %v657_v14 = vpop.f32.mrf.mxu3  ;;  %v570_v19 = vadd.f32 %v1802_v33, %v540_v27 }
 0x1d8   : > { %v687_v22 = vadd.f32 %v1804_v34, %v657_v14  ;;  %v923_v14 = vperm.slane %v827_v11, 1 }
 0x1d9   : > { %v762_v46 = vpop.f32.mrf.mxu0  ;;  %v578_v40 = vadd.f32 %v1814_v48, %v570_v19 }
 0x1da   : > { %v1806_v44 = vpop.f32.mrf.mxu1  ;;  %v694_v29 = vadd.f32 %v687_v22, %v577_v25 }
 0x1df   : > { %v660_v32 = vpop.f32.mrf.mxu3 }
 0x1e0   : > { %v690_v38 = vadd.f32 %v1806_v44, %v660_v32 }
 0x1e1   : > { %v765_v2 = vpop.f32.mrf.mxu0 }
 0x1e2   : > { %v791_v57 = vpop.f32.mrf.mxu1  ;;  %v695_v45 = vadd.f32 %v690_v38, %v578_v40 }
 0x1e3   : > { %v792_v61 = vadd.f32 %v791_v57, %v762_v46 }
 0x1e5   : > { %v803_v1 = vadd.f32 %v792_v61, %v692_v60 }
 0x1e7   : > { %v807_v7 = vmax.f32 %v803_v1, 0.0 }
 0x1e9   : > { %v816_v5 = vrot.slane %v807_v7, 7  ;;  %v768_v24 = vpop.f32.mrf.mxu0 }
 0x1ea   : > { %v794_v15 = vpop.f32.mrf.mxu1 }
 0x1eb   : > { %v825_v17 = vsel %vm815_vm6, 0.0, %v816_v5  ;;  %v795_v18 = vadd.f32 %v794_v15, %v765_v2 }
 0x1ec   : > { %1316 = vmatmul.msk.f32.vlgmr.msra.gmra.mxu2 %vm846_vm7, %v825_v17  ;;  %1321 = vmatmul.msk.f32.vlgmr.msra.gmra.mxu3 %vm846_vm7, %v825_v17  ;;  %v954_v35 = vrot.slane %v825_v17, 1  ;;  %v1062_v56 = vrot.slane %v825_v17, 2 }
 0x1ed   : > { %v804_v21 = vadd.f32 %v795_v18, %v693_v16 }
 0x1ef   : > { %v808_v23 = vmax.f32 %v804_v21, 0.0 }
 0x1f1   : > { %v817_v26 = vrot.slane %v808_v23, 7  ;;  %v771_v42 = vpop.f32.mrf.mxu0 }
 0x1f2   : > { %v797_v28 = vpop.f32.mrf.mxu1 }
 0x1f3   : > { %v798_v30 = vadd.f32 %v797_v28, %v768_v24  ;;  %v818_v31 = vsel %vm815_vm6, %v816_v5, %v817_v26  ;;  %v922_v5 = vperm.slane %v827_v11, 0 }
 0x1f4   : > { %1317 = vmatmul.msk.f32.gmra.mxu2 %vm846_vm7, %v818_v31  ;;  %v955_v36 = vrot.slane %v818_v31, 1  ;;  %1322 = vmatmul.msk.f32.gmra.mxu3 %vm846_vm7, %v818_v31  ;;  %v1063_v54 = vrot.slane %v818_v31, 2 }
 0x1f5   : > { %v805_v34 = vadd.f32 %v798_v30, %v694_v29 }
 0x1f6   : > { %v956_v37 = vsel %vm603_vm3, %v954_v35, %v955_v36  ;;  %v1064_v58 = vsel %vm714_vm4, %v1062_v56, %v1063_v54 }
 0x1f7   : > { %v809_v39 = vmax.f32 %v805_v34, 0.0  ;;  %1326 = vmatmul.msk.f32.vlgmr.msra.gmra.mxu0 %vm846_vm7, %v956_v37  ;;  %1331 = vmatmul.msk.f32.vlgmr.msra.gmra.mxu1 %vm846_vm7, %v956_v37 }
 0x1f9   : > { %v819_v41 = vrot.slane %v809_v39, 7 }
 0x1fa   : > { %v800_v43 = vpop.f32.mrf.mxu1 }
 0x1fb   : > { %v801_v46 = vadd.f32 %v800_v43, %v771_v42  ;;  %v820_v47 = vsel %vm815_vm6, %v817_v26, %v819_v41 }
 0x1fc   : > { %1318 = vmatmul.msk.f32.gmra.mxu2 %vm846_vm7, %v820_v47  ;;  %1323 = vmatmul.msk.f32.gmra.mxu3 %vm846_vm7, %v820_v47  ;;  %v957_v33 = vrot.slane %v820_v47, 1  ;;  %v1065_v60 = vrot.slane %v820_v47, 2 }
 0x1fd   : > { %v806_v44 = vadd.f32 %v801_v46, %v695_v45 }
 0x1fe   : > { %v958_v49 = vsel %vm603_vm3, %v955_v36, %v957_v33  ;;  %v1066_v61 = vsel %vm714_vm4, %v1063_v54, %v1065_v60 }
 0x1ff   : > { %v810_v50 = vmax.f32 %v806_v44, 0.0  ;;  %1327 = vmatmul.msk.f32.gmra.mxu0 %vm846_vm7, %v958_v49  ;;  %1332 = vmatmul.msk.f32.gmra.mxu1 %vm846_vm7, %v958_v49 }
 0x201   : > { %v821_v48 = vrot.slane %v810_v50, 7 }
 0x203   : > { %v822_v51 = vsel %vm815_vm6, %v819_v41, %v821_v48  ;;  %v826_v55 = vsel %vm815_vm6, %v821_v48, 0.0 }
 0x204   : > { %1319 = vmatmul.msk.f32.gmra.mxu2 %vm846_vm7, %v822_v51  ;;  %1324 = vmatmul.msk.f32.gmra.mxu3 %vm846_vm7, %v822_v51  ;;  %v959_v52 = vrot.slane %v822_v51, 1  ;;  %v961_v57 = vrot.slane %v826_v55, 1  ;;  %v1067_v62 = vrot.slane %v822_v51, 2  ;;  %v1069_v0 = vrot.slane %v826_v55, 2 }
 0x206   : > { %v960_v53 = vsel %vm603_vm3, %v957_v33, %v959_v52  ;;  %v962_v59 = vsel %vm603_vm3, %v959_v52, %v961_v57  ;;  %v1068_v63 = vsel %vm714_vm4, %v1065_v60, %v1067_v62  ;;  %v1070_v1 = vsel %vm714_vm4, %v1067_v62, %v1069_v0 }
 0x207   : > { %1328 = vmatmul.msk.f32.gmra.mxu0 %vm846_vm7, %v960_v53  ;;  %1333 = vmatmul.msk.f32.gmra.mxu1 %vm846_vm7, %v960_v53 }
 0x20c   : > { %1336 = vmatmul.msk.f32.vlgmr.msrb.gmra.mxu2 %vm846_vm7, %v1064_v58  ;;  %1341 = vmatmul.msk.f32.vlgmr.msrb.gmra.mxu3 %vm846_vm7, %v1064_v58 }
 0x20f   : > { %1329 = vmatmul.msk.f32.gmra.mxu0 %vm846_vm7, %v962_v59  ;;  %1334 = vmatmul.msk.f32.gmra.mxu1 %vm846_vm7, %v962_v59 }
 0x214   : > { %1337 = vmatmul.msk.f32.gmra.mxu2 %vm846_vm7, %v1066_v61  ;;  %1342 = vmatmul.msk.f32.gmra.mxu3 %vm846_vm7, %v1066_v61 }
 0x21c   : > { %1338 = vmatmul.msk.f32.gmra.mxu2 %vm846_vm7, %v1068_v63  ;;  %1343 = vmatmul.msk.f32.gmra.mxu3 %vm846_vm7, %v1068_v63 }
 0x224   : > { %1339 = vmatmul.msk.f32.gmra.mxu2 %vm846_vm7, %v1070_v1  ;;  %1344 = vmatmul.msk.f32.gmra.mxu3 %vm846_vm7, %v1070_v1 }
 0x26f   : > { %v880_v2 = vpop.f32.mrf.mxu2  ;;  %v909_v3 = vpop.f32.mrf.mxu3 }
 0x270   : > { %v926_v15 = vadd.f32 %v922_v5, %v880_v2  ;;  %v927_v16 = vadd.f32 %v923_v14, %v909_v3 }
 0x274   : > { %v994_v9 = vpop.f32.mrf.mxu0  ;;  %v1023_v10 = vpop.f32.mrf.mxu1 }
 0x275   : > { %v1035_v17 = vadd.f32 %v994_v9, %v926_v15  ;;  %v1036_v18 = vadd.f32 %v1023_v10, %v927_v16 }
 0x277   : > { %v883_v4 = vpop.f32.mrf.mxu2  ;;  %v912_v6 = vpop.f32.mrf.mxu3 }
 0x278   : > { %v928_v28 = vadd.f32 %v922_v5, %v883_v4  ;;  %v929_v29 = vadd.f32 %v923_v14, %v912_v6 }
 0x27c   : > { %v997_v20 = vpop.f32.mrf.mxu0  ;;  %v1026_v21 = vpop.f32.mrf.mxu1 }
 0x27d   : > { %v1037_v30 = vadd.f32 %v997_v20, %v928_v28  ;;  %v1038_v31 = vadd.f32 %v1026_v21, %v929_v29 }
 0x27f   : > { %v886_v7 = vpop.f32.mrf.mxu2  ;;  %v915_v8 = vpop.f32.mrf.mxu3 }
 0x280   : > { %v930_v40 = vadd.f32 %v922_v5, %v886_v7  ;;  %v931_v41 = vadd.f32 %v923_v14, %v915_v8 }
 0x284   : > { %v1000_v34 = vpop.f32.mrf.mxu0  ;;  %v1029_v37 = vpop.f32.mrf.mxu1 }
 0x285   : > { %v1039_v42 = vadd.f32 %v1000_v34, %v930_v40  ;;  %v1040_v43 = vadd.f32 %v1029_v37, %v931_v41 }
 0x287   : > { %v889_v12 = vpop.f32.mrf.mxu2  ;;  %v918_v13 = vpop.f32.mrf.mxu3 }
 0x288   : > { %v932_v51 = vadd.f32 %v922_v5, %v889_v12  ;;  %v933_v52 = vadd.f32 %v923_v14, %v918_v13 }
 0x28c   : > { %v1003_v50 = vpop.f32.mrf.mxu0  ;;  %v1032_v48 = vpop.f32.mrf.mxu1 }
 0x28d   : > { %v1041_v53 = vadd.f32 %v1003_v50, %v932_v51  ;;  %v1042_v54 = vadd.f32 %v1032_v48, %v933_v52 }
 0x28f   : > { %v1102_v22 = vpop.f32.mrf.mxu2  ;;  %v1131_v23 = vpop.f32.mrf.mxu3 }
 0x290   : > { %v1143_v24 = vadd.f32 %v1102_v22, %v1035_v17  ;;  %v1144_v25 = vadd.f32 %v1131_v23, %v1036_v18 }
 0x292   : > { %v1151_v26 = vmax.f32 %v1143_v24, 0.0  ;;  %v1152_v27 = vmax.f32 %v1144_v25, 0.0 }
 0x294   : > { %1159 = vst [vmem:[%s1870_s19] sm:$0xff] %v1151_v26 }
 0x295   : > { %1160 = vst [vmem:[%s1870_s19 + $0x8] sm:$0xff] %v1152_v27 }
 0x297   : > { %v1105_v32 = vpop.f32.mrf.mxu2  ;;  %v1134_v35 = vpop.f32.mrf.mxu3 }
 0x298   : > { %v1145_v36 = vadd.f32 %v1105_v32, %v1037_v30  ;;  %v1146_v19 = vadd.f32 %v1134_v35, %v1038_v31 }
 0x29a   : > { %v1153_v38 = vmax.f32 %v1145_v36, 0.0  ;;  %v1154_v39 = vmax.f32 %v1146_v19, 0.0 }
 0x29c   : > { %1161 = vst [vmem:[%s1870_s19 + $0x10] sm:$0xff] %v1153_v38 }
 0x29d   : > { %1162 = vst [vmem:[%s1870_s19 + $0x18] sm:$0xff] %v1154_v39 }
 0x29f   : > { %v1108_v45 = vpop.f32.mrf.mxu2  ;;  %v1137_v46 = vpop.f32.mrf.mxu3 }
 0x2a0   : > { %v1147_v47 = vadd.f32 %v1108_v45, %v1039_v42  ;;  %v1148_v33 = vadd.f32 %v1137_v46, %v1040_v43 }
 0x2a2   : > { %v1155_v44 = vmax.f32 %v1147_v47, 0.0  ;;  %v1156_v49 = vmax.f32 %v1148_v33, 0.0 }
 0x2a4   : > { %1163 = vst [vmem:[%s1870_s19 + $0x20] sm:$0xff] %v1155_v44 }
 0x2a5   : > { %1164 = vst [vmem:[%s1870_s19 + $0x28] sm:$0xff] %v1156_v49 }
 0x2a7   : > { %v1111_v55 = vpop.f32.mrf.mxu2  ;;  %v1140_v56 = vpop.f32.mrf.mxu3 }
 0x2a8   : > { %v1149_v57 = vadd.f32 %v1111_v55, %v1041_v53  ;;  %v1150_v58 = vadd.f32 %v1140_v56, %v1042_v54 }
 0x2aa   : > { %v1157_v59 = vmax.f32 %v1149_v57, 0.0  ;;  %v1158_v60 = vmax.f32 %v1150_v58, 0.0 }
 0x2ac   : > { %1165 = vst [vmem:[%s1870_s19 + $0x30] sm:$0xff] %v1157_v59 }
 0x2ad   : > { %1166 = vst [vmem:[%s1870_s19 + $0x38] sm:$0xff] %v1158_v60 }
 0x2ae   : > { %1550 = shalt.err (!%p1547_p8)
}
 0x2af   : > { %s1602_s16 = smov 256   ;;  %s1603_s18 = smov 16  }
 0x2b0   : > { %1368 = dma.vmem_to_hbm [thread:$0]  (%p1682_p5), %s1181_s9, 1024, %s1183_s28, %s1168_s14, %s1602_s16, %s1602_s16, %s1603_s18  }
 0x2b1 PF: > { %p1390_p9 = scmp.ge.s32.totalorder %s1593_s27, 2  ;;  %s1197_s19 = sand.u32 1, %s1581_s24  }
 0x2b2   : > { %s1198_s22 = scalar_lea.sflag [#allocation4], %s1197_s19 }
 0x2b3   : > { %p1381_p10 = pnand %p1390_p9, %p1686_p6 }
 0x2b5   : > { %p1382_p11 = pneg %p1381_p10 }
 0x2b7   : > { %1576 = dma.done.wait (%p1382_p11), %s1198_s22, 1024  }
 0x2b8   : > { %1578 = vsyncadd (%p1382_p11), %s1198_s22, 4294966272  ;;  %p19_p12 = scmp.ge.s32.totalorder %s1669_s30, 4   ;;  %s1930_s24 = smov %s1585_s25 }
 0x2b9   : > { %s1931_s25 = smov %s1589_s26  ;;  %s1932_s26 = smov %s1680_s10 }
 0x2ba   : > { %s1933_s27 = smov %s1669_s30  ;;  %21 = sbr.rel (!%p19_p12) target bundleno = 8 (0x8), region = 100 }
 0x2bf   :  { %1204 = vsyncpa [#allocation3], 1 }
 0x2c0   :  { %1206 = vsyncpa [#allocation3 + $0x1], 1 }
 0x2c1   :  { %1207 = vsyncpa [#allocation6], 1 }
 0x2c2   :  { %1208 = vsyncpa [#allocation4], 1 }
 0x2c3   :  { %1210 = vsyncpa [#allocation4 + $0x1], 1 }

</bundles_post_ra>
